<compile_context>
chip_gen: v5e
topology: v5e:2x2
jax: 0.10.0
libtpu: 0.0.40
codegen_flags: <defaults>
</compile_context>

<pallas_src>
import functools

import jax
import jax.numpy as jnp
from jax.experimental import pallas as pl
from jax.experimental.pallas import tpu as pltpu


def _mlp_kernel(*refs, cat_offsets, c_total):
    """Fused 3-layer MLP with in-kernel embedding gather (merged multi-hot matmul).

    refs layout (n_cat > 0): x_num, x_cat, w1n, m_stack, b1, w2, b2, w3, b3, out
    refs layout (n_cat ==0): x_num,        w1n,          b1, w2, b2, w3, b3, out
    BN(eval) affines are already folded into the weights/biases.
    """
    n_cat = len(cat_offsets)
    if n_cat:
        x_num_ref, x_cat_ref = refs[0], refs[1]
        (w1n_ref, m_ref, b1_ref, w2_ref, b2_ref, w3_ref, b3_ref, o_ref) = refs[2:]
    else:
        x_num_ref = refs[0]
        (w1n_ref, b1_ref, w2_ref, b2_ref, w3_ref, b3_ref, o_ref) = refs[1:]

    tb = x_num_ref.shape[0]

    # ---- layer 1: numeric features -------------------------------------------
    h = jnp.dot(x_num_ref[...], w1n_ref[...], preferred_element_type=jnp.float32)

    # ---- layer 1: all categorical features via ONE multi-hot matmul ----------
    if n_cat:
        iota = jax.lax.broadcasted_iota(jnp.int32, (tb, c_total), 1)  # shared iota
        multihot = None
        for j, off in enumerate(cat_offsets):        # offsets are static Python ints
            idx = x_cat_ref[:, j:j + 1] + off        # (TB, 1) int32, pre-offset rows
            onehot = (iota == idx)                   # exact row selection
            multihot = onehot if multihot is None else (multihot | onehot)
        h = h + jnp.dot(multihot.astype(jnp.float32), m_ref[...],
                        preferred_element_type=jnp.float32)

    h = jnp.maximum(h + b1_ref[...], 0.0)            # bias (BN1 folded) + ReLU

    # ---- layer 2 (BN2 folded) --------------------------------------------------
    h = jnp.maximum(
        jnp.dot(h, w2_ref[...], preferred_element_type=jnp.float32) + b2_ref[...],
        0.0)

    # ---- layer 3 (unpadded output width; OOB rows of the final block dropped) --
    o_ref[...] = jnp.dot(h, w3_ref[...], preferred_element_type=jnp.float32) + b3_ref[...]


def fold_params(emb_tables, w1, b1, s1, t1, w2, b2, s2, t2, w3, b3, *, num_dim):
    """One-time parameter prep (outside the hot path).

    Folds the BN eval affine into the Linears and pushes each embedding table
    through its slice of W1; the folded per-feature tables are stacked into a
    single (sum C_j, hidden) matrix for the merged multi-hot matmul.
    """
    w1s = w1 * s1                              # (D_in, H) with BN1 scale folded in
    b1f = b1 * s1 + t1                         # (1, H)
    w1n = w1s[:num_dim, :]                     # numeric-feature slice of W1

    m_parts = []
    off = num_dim
    for tbl in emb_tables:
        d = tbl.shape[1]
        m_parts.append(jnp.dot(tbl, w1s[off:off + d, :]))   # (C_j, H) emb->hidden
        off += d
    m_stack = jnp.concatenate(m_parts, axis=0) if m_parts else None  # (sum C_j, H)

    w2f = w2 * s2
    b2f = b2 * s2 + t2

    return (w1n, m_stack, b1f, w2f, b2f, w3, b3)


@functools.partial(jax.jit, static_argnames=("cat_sizes", "tb_cap"))
def mlp_forward(x_num, x_cat, folded, *, cat_sizes=(), tb_cap=1024):
    """x_num: (B, num_dim) f32; x_cat: (B, n_cat) int32 or None -> (B, output_dim)."""
    (w1n, m_stack, b1f, w2f, b2f, w3, b3) = folded
    n_cat = len(cat_sizes)
    c_total = int(sum(cat_sizes))
    cat_offsets, acc = [], 0
    for c in cat_sizes:
        cat_offsets.append(acc)
        acc += int(c)
    cat_offsets = tuple(cat_offsets)

    B, num_dim = x_num.shape
    out_dim = w3.shape[1]

    # Batch tile: multiple of 8 (sublane granule), capped at tb_cap, balanced so
    # that large batches split into >= 2 roughly equal grid steps (v7x has two
    # TensorCores sharding the "parallel" axis).  No wrapper-side batch padding:
    # grid = cdiv(B, tb) and the final partial block's OOB rows are dropped on
    # write (their inputs are garbage but row-independent, so no valid row is
    # affected).
    g8 = -(-B // 8)                                  # number of 8-row granules
    n_steps = max(1, -(-(g8 * 8) // tb_cap))
    tb = -(-g8 // n_steps) * 8
    grid = (pl.cdiv(B, tb),)

    resident = lambda a: pl.BlockSpec(a.shape, lambda i: (0, 0))
    batched = lambda shape: pl.BlockSpec(shape, lambda i: (i, 0))

    args, in_specs = [x_num], [batched((tb, num_dim))]
    if n_cat:
        args.append(x_cat)
        in_specs.append(batched((tb, n_cat)))
    args.append(w1n)
    in_specs.append(resident(w1n))
    if n_cat:
        args.append(m_stack)
        in_specs.append(resident(m_stack))
    for p in (b1f, w2f, b2f, w3, b3):
        args.append(p)
        in_specs.append(resident(p))

    return pl.pallas_call(
        functools.partial(_mlp_kernel, cat_offsets=cat_offsets, c_total=c_total),
        out_shape=jax.ShapeDtypeStruct((B, out_dim), jnp.float32),
        grid=grid,
        in_specs=in_specs,
        out_specs=batched((tb, out_dim)),
        compiler_params=pltpu.CompilerParams(
            dimension_semantics=("parallel",)),
    )(*args)


def _linear_init(key, fan_in, fan_out):
    """PyTorch nn.Linear default init: U(-1/sqrt(fan_in), 1/sqrt(fan_in))."""
    kw, kb = jax.random.split(key)
    bound = 1.0 / jnp.sqrt(jnp.float32(fan_in))
    w = jax.random.uniform(kw, (fan_in, fan_out), jnp.float32, -bound, bound)
    b = jax.random.uniform(kb, (1, fan_out), jnp.float32, -bound, bound)
    return w, b


def _bn_eval_affine(key, dim, eps=1e-5):
    """Fold BatchNorm1d eval-mode params into (scale, shift)."""
    k1, k2, k3, k4 = jax.random.split(key, 4)
    gamma = 1.0 + 0.1 * jax.random.normal(k1, (1, dim), jnp.float32)
    beta = 0.1 * jax.random.normal(k2, (1, dim), jnp.float32)
    running_mean = 0.1 * jax.random.normal(k3, (1, dim), jnp.float32)
    running_var = jnp.abs(1.0 + 0.1 * jax.random.normal(k4, (1, dim), jnp.float32))
    scale = gamma / jnp.sqrt(running_var + eps)
    shift = beta - running_mean * scale
    return scale, shift


def reference_forward(x_num, x_cat, emb_tables, params):
    """Pure-JAX reference of the original (unfused, unfolded) module forward."""
    (w1, b1, s1, t1, w2, b2, s2, t2, w3, b3) = params
    xs = [x_num]
    for j, tbl in enumerate(emb_tables):
        xs.append(jnp.take(tbl, x_cat[:, j], axis=0))
    x = jnp.concatenate(xs, axis=-1)
    h = jnp.maximum((x @ w1 + b1) * s1 + t1, 0.0)
    h = jnp.maximum((h @ w2 + b2) * s2 + t2, 0.0)
    return h @ w3 + b3


if __name__ == "__main__":
    # --- config (MLPConfig) ---
    num_dim = 6
    cat_sizes = (10, 7)
    cat_emb_dims = (3, 5)
    hidden_dim = 32
    output_dim = 4
    batch = 8
    D_in = num_dim + sum(cat_emb_dims)   # 14

    key = jax.random.PRNGKey(0)
    k_xn, k_xc, k_e0, k_e1, k_l1, k_l2, k_l3, k_bn1, k_bn2 = jax.random.split(key, 9)

    # --- inputs ---
    x_num = jax.random.normal(k_xn, (batch, num_dim), jnp.float32)
    x_cat = jnp.stack(
        [jax.random.randint(k_xc, (batch,), 0, cat_sizes[0]),
         jax.random.randint(jax.random.fold_in(k_xc, 1), (batch,), 0, cat_sizes[1])],
        axis=-1).astype(jnp.int32)                 # (batch, 2)

    # --- parameters (deterministic, PyTorch-style init) ---
    emb_tables = [
        jax.random.normal(k_e0, (cat_sizes[0], cat_emb_dims[0]), jnp.float32),  # nn.Embedding: N(0,1)
        jax.random.normal(k_e1, (cat_sizes[1], cat_emb_dims[1]), jnp.float32),
    ]
    w1, b1 = _linear_init(k_l1, D_in, hidden_dim)
    w2, b2 = _linear_init(k_l2, hidden_dim, hidden_dim)
    w3, b3 = _linear_init(k_l3, hidden_dim, output_dim)
    s1, t1 = _bn_eval_affine(k_bn1, hidden_dim)
    s2, t2 = _bn_eval_affine(k_bn2, hidden_dim)

    # --- one-time parameter folding (BN affine, stacked emb->hidden tables) ---
    folded = fold_params(emb_tables, w1, b1, s1, t1, w2, b2, s2, t2, w3, b3,
                         num_dim=num_dim)

    # --- run the fused Pallas kernel ---
    y = mlp_forward(x_num, x_cat, folded, cat_sizes=cat_sizes)
    y = jax.block_until_ready(y)

    # --- validate against the unfused, unfolded reference ---
    # Tolerance accounts for MXU bf16-pass rounding of f32 matmuls done in a
    # different (folded) factorization than the XLA reference.
    y_ref = reference_forward(x_num, x_cat, emb_tables,
                              (w1, b1, s1, t1, w2, b2, s2, t2, w3, b3))
    assert y.shape == (batch, output_dim)
    max_err = float(jnp.max(jnp.abs(y - y_ref)))
    assert jnp.allclose(y, y_ref, atol=1e-2, rtol=1e-2), (
        f"mismatch vs JAX reference (max abs err {max_err})")

    print("KERNEL_OK")
</pallas_src>

<mosaic_0001>
module attributes {stable_mosaic.version = 11 : i64} {
  func.func @_mlp_kernel(%arg0: i32, %arg1: memref<8x6xf32, #tpu.memory_space<vmem>>, %arg2: memref<8x2xi32, #tpu.memory_space<vmem>>, %arg3: memref<6x32xf32, #tpu.memory_space<vmem>>, %arg4: memref<17x32xf32, #tpu.memory_space<vmem>>, %arg5: memref<1x32xf32, #tpu.memory_space<vmem>>, %arg6: memref<32x32xf32, #tpu.memory_space<vmem>>, %arg7: memref<1x32xf32, #tpu.memory_space<vmem>>, %arg8: memref<32x4xf32, #tpu.memory_space<vmem>>, %arg9: memref<1x4xf32, #tpu.memory_space<vmem>>, %arg10: memref<8x4xf32, #tpu.memory_space<vmem>>) attributes {dimension_semantics = [#tpu.dimension_semantics<parallel>], iteration_bounds = array<i64: 1>, scalar_prefetch = 0 : i64, scratch_operands = 0 : i64, tpu.core_type = #tpu.core_type<tc>, window_params = [{transform_indices = @transform_0, window_bounds = array<i64: 8, 6>}, {transform_indices = @transform_1, window_bounds = array<i64: 8, 2>}, {pipeline_mode = #tpu.pipeline_mode<synchronous>, transform_indices = @transform_2, window_bounds = array<i64: 6, 32>}, {pipeline_mode = #tpu.pipeline_mode<synchronous>, transform_indices = @transform_3, window_bounds = array<i64: 17, 32>}, {pipeline_mode = #tpu.pipeline_mode<synchronous>, transform_indices = @transform_4, window_bounds = array<i64: 1, 32>}, {pipeline_mode = #tpu.pipeline_mode<synchronous>, transform_indices = @transform_5, window_bounds = array<i64: 32, 32>}, {pipeline_mode = #tpu.pipeline_mode<synchronous>, transform_indices = @transform_6, window_bounds = array<i64: 1, 32>}, {pipeline_mode = #tpu.pipeline_mode<synchronous>, transform_indices = @transform_7, window_bounds = array<i64: 32, 4>}, {pipeline_mode = #tpu.pipeline_mode<synchronous>, transform_indices = @transform_8, window_bounds = array<i64: 1, 4>}, {transform_indices = @transform_9, window_bounds = array<i64: 8, 4>}]} {
    %c0 = arith.constant 0 : index
    %c0_0 = arith.constant 0 : index
    %0 = vector.load %arg1[%c0, %c0_0] : memref<8x6xf32, #tpu.memory_space<vmem>>, vector<8x6xf32>
    %c0_1 = arith.constant 0 : index
    %c0_2 = arith.constant 0 : index
    %1 = vector.load %arg3[%c0_1, %c0_2] : memref<6x32xf32, #tpu.memory_space<vmem>>, vector<6x32xf32>
    %cst = arith.constant dense<0.000000e+00> : vector<8x32xf32>
    %2 = tpu.matmul %0, %1, %cst {dimension_numbers = #tpu.dot_dimension_numbers<[1], [0], [0], [1], [0, 0, 1, 1], [], []>} : vector<8x6xf32>, vector<6x32xf32>, vector<8x32xf32> -> vector<8x32xf32>
    %3 = tpu.iota {dimensions = array<i32: 1>} : vector<8x17xi32>
    %c0_3 = arith.constant 0 : index
    %c0_4 = arith.constant 0 : index
    %4 = vector.load %arg2[%c0_3, %c0_4] : memref<8x2xi32, #tpu.memory_space<vmem>>, vector<8x1xi32>
    %c0_i32 = arith.constant 0 : i32
    %5 = vector.broadcast %c0_i32 : i32 to vector<8x1xi32>
    %6 = arith.addi %4, %5 : vector<8x1xi32>
    %7 = vector.broadcast %6 : vector<8x1xi32> to vector<8x17xi32>
    %8 = arith.cmpi eq, %3, %7 : vector<8x17xi32>
    %c0_5 = arith.constant 0 : index
    %c1 = arith.constant 1 : index
    %9 = vector.load %arg2[%c0_5, %c1] : memref<8x2xi32, #tpu.memory_space<vmem>>, vector<8x1xi32>
    %c10_i32 = arith.constant 10 : i32
    %10 = vector.broadcast %c10_i32 : i32 to vector<8x1xi32>
    %11 = arith.addi %9, %10 : vector<8x1xi32>
    %12 = vector.broadcast %11 : vector<8x1xi32> to vector<8x17xi32>
    %13 = arith.cmpi eq, %3, %12 : vector<8x17xi32>
    %14 = arith.ori %8, %13 : vector<8x17xi1>
    %15 = arith.extui %14 : vector<8x17xi1> to vector<8x17xi32>
    %16 = arith.sitofp %15 : vector<8x17xi32> to vector<8x17xf32>
    %c0_6 = arith.constant 0 : index
    %c0_7 = arith.constant 0 : index
    %17 = vector.load %arg4[%c0_6, %c0_7] : memref<17x32xf32, #tpu.memory_space<vmem>>, vector<17x32xf32>
    %cst_8 = arith.constant dense<0.000000e+00> : vector<8x32xf32>
    %18 = tpu.matmul %16, %17, %cst_8 {dimension_numbers = #tpu.dot_dimension_numbers<[1], [0], [0], [1], [0, 0, 1, 1], [], []>} : vector<8x17xf32>, vector<17x32xf32>, vector<8x32xf32> -> vector<8x32xf32>
    %19 = arith.addf %2, %18 : vector<8x32xf32>
    %c0_9 = arith.constant 0 : index
    %c0_10 = arith.constant 0 : index
    %20 = vector.load %arg5[%c0_9, %c0_10] : memref<1x32xf32, #tpu.memory_space<vmem>>, vector<1x32xf32>
    %21 = vector.broadcast %20 : vector<1x32xf32> to vector<8x32xf32>
    %22 = arith.addf %19, %21 : vector<8x32xf32>
    %cst_11 = arith.constant 0.000000e+00 : f32
    %23 = vector.broadcast %cst_11 : f32 to vector<8x32xf32>
    %24 = arith.maximumf %22, %23 : vector<8x32xf32>
    %c0_12 = arith.constant 0 : index
    %c0_13 = arith.constant 0 : index
    %25 = vector.load %arg6[%c0_12, %c0_13] : memref<32x32xf32, #tpu.memory_space<vmem>>, vector<32x32xf32>
    %cst_14 = arith.constant dense<0.000000e+00> : vector<8x32xf32>
    %26 = tpu.matmul %24, %25, %cst_14 {dimension_numbers = #tpu.dot_dimension_numbers<[1], [0], [0], [1], [0, 0, 1, 1], [], []>} : vector<8x32xf32>, vector<32x32xf32>, vector<8x32xf32> -> vector<8x32xf32>
    %c0_15 = arith.constant 0 : index
    %c0_16 = arith.constant 0 : index
    %27 = vector.load %arg7[%c0_15, %c0_16] : memref<1x32xf32, #tpu.memory_space<vmem>>, vector<1x32xf32>
    %28 = vector.broadcast %27 : vector<1x32xf32> to vector<8x32xf32>
    %29 = arith.addf %26, %28 : vector<8x32xf32>
    %cst_17 = arith.constant 0.000000e+00 : f32
    %30 = vector.broadcast %cst_17 : f32 to vector<8x32xf32>
    %31 = arith.maximumf %29, %30 : vector<8x32xf32>
    %c0_18 = arith.constant 0 : index
    %c0_19 = arith.constant 0 : index
    %32 = vector.load %arg8[%c0_18, %c0_19] : memref<32x4xf32, #tpu.memory_space<vmem>>, vector<32x4xf32>
    %cst_20 = arith.constant dense<0.000000e+00> : vector<8x4xf32>
    %33 = tpu.matmul %31, %32, %cst_20 {dimension_numbers = #tpu.dot_dimension_numbers<[1], [0], [0], [1], [0, 0, 1, 1], [], []>} : vector<8x32xf32>, vector<32x4xf32>, vector<8x4xf32> -> vector<8x4xf32>
    %c0_21 = arith.constant 0 : index
    %c0_22 = arith.constant 0 : index
    %34 = vector.load %arg9[%c0_21, %c0_22] : memref<1x4xf32, #tpu.memory_space<vmem>>, vector<1x4xf32>
    %35 = vector.broadcast %34 : vector<1x4xf32> to vector<8x4xf32>
    %36 = arith.addf %33, %35 : vector<8x4xf32>
    %c0_23 = arith.constant 0 : index
    %c0_24 = arith.constant 0 : index
    %37 = vector.load %arg10[%c0_23, %c0_24] : memref<8x4xf32, #tpu.memory_space<vmem>>, vector<8x4xf32>
    tpu.vector_store %arg10[%c0_23, %c0_24], %36 {strides = array<i32>} : memref<8x4xf32, #tpu.memory_space<vmem>>, vector<8x4xf32>,
    return
  }
  func.func @transform_0(%arg0: i32) -> (i32, i32) {
    %c0_i32 = arith.constant 0 : i32
    %c0_i32_0 = arith.constant 0 : i32
    return %arg0, %c0_i32 : i32, i32
  }
  func.func @transform_1(%arg0: i32) -> (i32, i32) {
    %c0_i32 = arith.constant 0 : i32
    %c0_i32_0 = arith.constant 0 : i32
    return %arg0, %c0_i32 : i32, i32
  }
  func.func @transform_2(%arg0: i32) -> (i32, i32) {
    %c0_i32 = arith.constant 0 : i32
    %c0_i32_0 = arith.constant 0 : i32
    %c0_i32_1 = arith.constant 0 : i32
    return %c0_i32, %c0_i32_0 : i32, i32
  }
  func.func @transform_3(%arg0: i32) -> (i32, i32) {
    %c0_i32 = arith.constant 0 : i32
    %c0_i32_0 = arith.constant 0 : i32
    %c0_i32_1 = arith.constant 0 : i32
    return %c0_i32, %c0_i32_0 : i32, i32
  }
  func.func @transform_4(%arg0: i32) -> (i32, i32) {
    %c0_i32 = arith.constant 0 : i32
    %c0_i32_0 = arith.constant 0 : i32
    %c0_i32_1 = arith.constant 0 : i32
    return %c0_i32, %c0_i32_0 : i32, i32
  }
  func.func @transform_5(%arg0: i32) -> (i32, i32) {
    %c0_i32 = arith.constant 0 : i32
    %c0_i32_0 = arith.constant 0 : i32
    %c0_i32_1 = arith.constant 0 : i32
    return %c0_i32, %c0_i32_0 : i32, i32
  }
  func.func @transform_6(%arg0: i32) -> (i32, i32) {
    %c0_i32 = arith.constant 0 : i32
    %c0_i32_0 = arith.constant 0 : i32
    %c0_i32_1 = arith.constant 0 : i32
    return %c0_i32, %c0_i32_0 : i32, i32
  }
  func.func @transform_7(%arg0: i32) -> (i32, i32) {
    %c0_i32 = arith.constant 0 : i32
    %c0_i32_0 = arith.constant 0 : i32
    %c0_i32_1 = arith.constant 0 : i32
    return %c0_i32, %c0_i32_0 : i32, i32
  }
  func.func @transform_8(%arg0: i32) -> (i32, i32) {
    %c0_i32 = arith.constant 0 : i32
    %c0_i32_0 = arith.constant 0 : i32
    %c0_i32_1 = arith.constant 0 : i32
    return %c0_i32, %c0_i32_0 : i32, i32
  }
  func.func @transform_9(%arg0: i32) -> (i32, i32) {
    %c0_i32 = arith.constant 0 : i32
    %c0_i32_0 = arith.constant 0 : i32
    return %arg0, %c0_i32 : i32, i32
  }
}

</mosaic_0001>

<bundles_post_ra>
// kernel: mlp_forward.1
= control target key start
LH: loop header
LB: loop body
LE: loop exit
PB: predicated region body
PF: predicated region fallthrough
CT: control target
= control target key end

     0   :  { %14 = vsyncpa [#allocation3], 0  ;;  %s392_s0 = inlined_call_operand.vmem [shape: f32[8,6], index: 0, kind: input, shape index: {}]   ;;  %s393_s1 = inlined_call_operand.vmem [shape: s32[8,2], index: 1, kind: input, shape index: {}]   ;;  %s394_s2 = inlined_call_operand.hbm [shape: f32[6,32], index: 2, kind: input, shape index: {}]   ;;  %s395_s3 = inlined_call_operand.hbm [shape: f32[17,32], index: 3, kind: input, shape index: {}]   ;;  %s396_s4 = inlined_call_operand.vmem [shape: f32[1,32], index: 4, kind: input, shape index: {}]   ;;  %s397_s5 = inlined_call_operand.vmem [shape: f32[32,32], index: 5, kind: input, shape index: {}]   ;;  %s398_s6 = inlined_call_operand.vmem [shape: f32[1,32], index: 6, kind: input, shape index: {}]   ;;  %s399_s7 = inlined_call_operand.vmem [shape: f32[32,4], index: 7, kind: input, shape index: {}]   ;;  %s400_s8 = inlined_call_operand.vmem [shape: f32[1,4], index: 8, kind: input, shape index: {}]   ;;  %s401_s9 = inlined_call_operand.vmem [shape: f32[8,4], index: 9, kind: output, shape index: {}]  }
   0x1   :  { %s25_s11 = sshll.u32 %s394_s2, 4  ;;  %s26_s11 = int_to_ptr.hbm [resolvable:$true] %s25_s11 }
   0x2   :  { %15 = vsyncpa [#allocation5], 0  ;;  %s287_s12 = smov [#allocation2]   ;;  %s35_s16 = sshll.u32 %s395_s3, 4  ;;  %s36_s16 = int_to_ptr.hbm [resolvable:$true] %s35_s16 }
   0x3   :  { %s27_s13 = sshll.u32 %s287_s12, 4  ;;  %s288_s17 = smov [#allocation4]   ;;  %s28_s13 = int_to_ptr.vmem [resolvable:$true] %s27_s13 }
   0x4   :  { %30 = dma.hbm_to_vmem [thread:$0]  %s26_s11, 128, %s28_s13, [#allocation3]  }
   0x5   :  { %s37_s18 = sshll.u32 %s288_s17, 4  ;;  %s289_s19 = smov 128   ;;  %s38_s18 = int_to_ptr.vmem [resolvable:$true] %s37_s18 }
   0x6   :  { %s290_s20 = smov 8  }
   0x7   :  { %43 = dma.hbm_to_vmem [thread:$0]  %s36_s16, 384, %s38_s18, [#allocation5], %s289_s19, %s289_s19, %s290_s20  }
   0x8   :  { %283 = dma.done.wait [#allocation3], 128  }
   0x9   :  { %284 = vsyncadd [#allocation3], 4294967168 }
   0xa   :  { %285 = dma.done.wait [#allocation5], 384  }
   0xb   :  { %286 = vsyncadd [#allocation5], 4294966912  ;;  %v291_v0 = vmov 0   ;;  %v66_v1 = vld [vmem:[%s393_s1] sm:$0xff]  ;;  %v292_v3 = vmov 1   ;;  %vm86_vm0 = vcmask 1040384   ;;  %v64_v10 = vlaneseq }
   0xc   :  { %230 = vset.pattern.permute.xlu0 %v291_v0  ;;  %v71_v2 = vadd.s32 10, %v66_v1  ;;  %v81_v4 = vld [vmem:[#allocation4 + $0x10] sm:$0x1]  ;;  %v80_v5 = vld [vmem:[#allocation4 + $0x8] sm:$0xff]  ;;  %v79_v6 = vld [vmem:[#allocation4] sm:$0xff]  ;;  %vm114_vm1 = vcmask 1045504  }
   0xd   :  { %68 = vperm.xlu0 %230, %v66_v1   ;;  %217 = vmatpush.msk.msra.mxu0 %vm86_vm0, %v81_v4  ;;  %v63_v7 = vld [vmem:[#allocation2] sm:$0x3f]  ;;  %vm110_vm2 = vcmask 48128   ;;  %v65_v11 = vand.u32 127, %v64_v10  ;;  %vm82_vm5 = vcmask 138240   ;;  %v293_v13 = vmov 0.0  }
   0xe   :  { %219 = vmatpush.msk.msra.mxu1 %vm114_vm1, %v63_v7  ;;  %v62_v8 = vld [vmem:[%s392_s0] sm:$0xff]  ;;  %v147_v15 = vld [vmem:[%s397_s5 + $0x18] sm:$0xff]  ;;  %v146_v16 = vld [vmem:[%s397_s5 + $0x10] sm:$0xff]  ;;  %vm152_vm7 = vcmask 261120   ;;  %vm208_vm8 = vcmask 31744  }
   0xf   :  { %104 = vmatpush.msra.mxu0 %v80_v5  ;;  %220 = vmatmul.msk.f32.vlgmr.msra.gmra.mxu1 %vm110_vm2, %v62_v8  ;;  %v145_v17 = vld [vmem:[%s397_s5 + $0x8] sm:$0xff]  ;;  %v144_v18 = vld [vmem:[%s397_s5] sm:$0xff]  ;;  %v180_v19 = vld [vmem:[%s399_s7 + $0x18] sm:$0xff] }
  0x10   :  { %168 = vmatpush.msra.mxu2 %v147_v15  ;;  %200 = vmatpush.msra.mxu3 %v180_v19  ;;  %v232_v21 = vld [vmem:[%s396_s4] ss:$0 sm:$0xff]  ;;  %v179_v26 = vld [vmem:[%s399_s7 + $0x10] sm:$0xff]  ;;  %v178_v27 = vld [vmem:[%s399_s7 + $0x8] sm:$0xff] }
  0x11   :  { %105 = vmatpush.msra.mxu0 %v79_v6  ;;  %v177_v28 = vld [vmem:[%s399_s7] sm:$0xff] }
  0x12   :  { %169 = vmatpush.msra.mxu2 %v146_v16  ;;  %201 = vmatpush.msra.mxu3 %v179_v26  ;;  %v233_v29 = vld [vmem:[%s398_s6] ss:$0 sm:$0xff] }
  0x13   :  { %v234_v33 = vld [vmem:[%s400_s8] ss:$0 sm:$0xff] }
  0x14   :  { %170 = vmatpush.msra.mxu2 %v145_v17  ;;  %202 = vmatpush.msra.mxu3 %v178_v27 }
  0x15   :  { %231 = vset.pattern.permute.xlu0 %v292_v3 }
  0x16   :  { %73 = vperm.xlu0 %231, %v71_v2   ;;  %171 = vmatpush.msra.mxu2 %v144_v18 }
  0x17   :  { %203 = vmatpush.msra.mxu3 %v177_v28 }
  0x7f   :  { %v69_v9 = vpop.permute.xlu0 %68 }
  0x80   :  { %vm70_vm3 = vcmp.eq.s32.totalorder %v65_v11, %v69_v9 }
  0x88   :  { %v74_v12 = vpop.permute.xlu0 %73 }
  0x89   :  { %vm75_vm4 = vcmp.eq.s32.totalorder %v65_v11, %v74_v12 }
  0x8a   :  { %vm76_vm6 = vmor %vm70_vm3, %vm75_vm4 }
  0x8b   :  { %v216_v14 = vsel %vm76_vm6, 1.0, %v293_v13 }
  0x8c   :  { %218 = vmatmul.msk.f32.vlgmr.msra.gmra.mxu0 %vm82_vm5, %v216_v14  ;;  %v135_v20 = vpop.f32.mrf.mxu1 }
 0x109   :  { %v107_v22 = vpop.f32.mrf.mxu0 }
 0x10a   :  { %v136_v23 = vadd.f32 %v135_v20, %v107_v22 }
 0x10c   :  { %v142_v24 = vadd.f32 %v232_v21, %v136_v23 }
 0x10e   :  { %v143_v25 = vmax.f32 %v142_v24, 0.0 }
 0x110   :  { %221 = vmatmul.msk.f32.vlgmr.msra.gmra.mxu2 %vm152_vm7, %v143_v25 }
 0x193   :  { %v173_v30 = vpop.f32.mrf.mxu2 }
 0x194   :  { %v174_v31 = vadd.f32 %v233_v29, %v173_v30 }
 0x196   :  { %v176_v32 = vmax.f32 %v174_v31, 0.0 }
 0x198   :  { %222 = vmatmul.msk.f32.vlgmr.msra.gmra.mxu3 %vm152_vm7, %v176_v32 }
 0x21b   :  { %v205_v34 = vpop.f32.mrf.mxu3 }
 0x21c   :  { %v206_v35 = vadd.f32 %v234_v33, %v205_v34 }
 0x21e   :  { %209 = vst.msk [vmem:[%s401_s9] sm:$0xff] %vm208_vm8, %v206_v35 }
 0x21f   :  { %214 = vsyncpa [#allocation3], 1 }
 0x220   :  { %215 = vsyncpa [#allocation5], 1 }

</bundles_post_ra>
